<compile_context>
chip_gen: v6e
topology: v6e:2x2x1
jax: 0.10.0
libtpu: 0.0.40
codegen_flags: <defaults>
</compile_context>

<pallas_src>
import jax
import jax.numpy as jnp
from jax.experimental import pallas as pl
from jax.experimental.pallas import tpu as pltpu


# ----------------------------------------------------------------------------
# Fast path: whole problem in one VMEM block (no grid, no pipelining overhead).
# ----------------------------------------------------------------------------
def _aug_lag_fast_kernel(rho_ref, x_ref, y_ref, a_ref, c_ref, dual_ref,
                         wbf_ref, wf_ref, out_ref):
    # objective residual, lane-dense row: r = w . X^T - y   (1, N)
    r = jax.lax.dot_general(
        wbf_ref[...], x_ref[...],
        dimension_numbers=(((1,), (1,)), ((), ())),
        preferred_element_type=jnp.float32,
    ) - y_ref[...]
    # constraint residual in full f32 (tiny: M x D): g = w . A^T - c   (1, M)
    g = jax.lax.dot_general(
        wf_ref[...], a_ref[...],
        dimension_numbers=(((1,), (1,)), ((), ())),
        preferred_element_type=jnp.float32,
    ) - c_ref[...]
    total = (0.5 * jnp.sum(r * r)
             + jnp.sum(dual_ref[...] * g)
             + 0.5 * rho_ref[0, 0] * jnp.sum(g * g))
    out_ref[...] = jnp.zeros_like(out_ref) + total


# ----------------------------------------------------------------------------
# Tiled streaming path: X streamed from HBM in (tile_n, D) bf16 tiles.
# ----------------------------------------------------------------------------
def _aug_lag_tiled_kernel(rho_ref, x_ref, y_ref, a_ref, c_ref, dual_ref,
                          wbf_ref, wf_ref, out_ref, acc_ref):
    j = pl.program_id(0)                       # "parallel" split (2 TCs on v7x)
    i = pl.program_id(1)                       # reduction over row tiles of X
    is_last = i == pl.num_programs(1) - 1

    @pl.when(i == 0)
    def _init():
        acc_ref[...] = jnp.zeros_like(acc_ref)

    # r = w . X_tile^T - y_tile  ->  (1, tile_n) lane-dense row (bf16 MXU, f32 acc)
    r = jax.lax.dot_general(
        wbf_ref[...], x_ref[...],
        dimension_numbers=(((1,), (1,)), ((), ())),
        preferred_element_type=jnp.float32,
    ) - y_ref[...]
    # lane-dense accumulation: no per-step cross-lane reduce / scalar broadcast
    acc_ref[...] += r * r

    @pl.when(is_last)
    def _finalize():
        obj = 0.5 * jnp.sum(acc_ref[...])
        # constraint terms (tiny, f32) are added by split 0 only
        g = jax.lax.dot_general(
            wf_ref[...], a_ref[...],
            dimension_numbers=(((1,), (1,)), ((), ())),
            preferred_element_type=jnp.float32,
        ) - c_ref[...]
        constr = (jnp.sum(dual_ref[...] * g)
                  + 0.5 * rho_ref[0, 0] * jnp.sum(g * g))
        total = obj + jnp.where(j == 0, constr, jnp.float32(0.0))
        out_ref[...] = jnp.zeros_like(out_ref) + total


def augmented_lagrangian(x, y, a, c, dual, w, rho, *, tile_n=1024, num_splits=1,
                         fast_path_bytes=8 * 1024 * 1024):
    """Augmented Lagrangian value for the least-squares / affine-constraint model.

    x    : (N, D) data matrix        (streamed as bf16)
    y    : (N,)   targets
    a    : (M, D) constraint matrix  (kept f32, tiny)
    c    : (M,)   constraint rhs
    dual : (M,)   dual variable
    w    : (D,)   model weights
    rho  : python float / scalar

    tile_n     : rows of X per streamed tile (1024 default; 2048-4096 on v7x,
                 cap ~1024 on v5e).
    num_splits : parallel outer grid axis; use 2 on v7x (2 TensorCores),
                 1 on v5e/v6e.
    """
    N, D = x.shape
    M, D2 = a.shape
    assert D == D2

    # lane-dense row layout for every vector operand (pure reshapes, no copies)
    y_row = y.reshape(1, -1).astype(jnp.float32)          # (1, N)
    c_row = c.reshape(1, -1).astype(jnp.float32)          # (1, M)
    dual_row = dual.reshape(1, -1).astype(jnp.float32)    # (1, M)
    w_bf = w.reshape(1, -1).astype(jnp.bfloat16)          # (1, D)  for X path
    w_f32 = w.reshape(1, -1).astype(jnp.float32)          # (1, D)  for constraint
    a_f32 = a.astype(jnp.float32)                          # (M, D)
    x_bf = x.astype(jnp.bfloat16)                          # no-op if already bf16
    rho_arr = jnp.array([[rho]], dtype=jnp.float32)

    x_bytes = N * D * 2  # bf16

    # ---------------- fast path: single VMEM block, no grid -----------------
    if x_bytes <= fast_path_bytes:
        out = pl.pallas_call(
            _aug_lag_fast_kernel,
            out_shape=jax.ShapeDtypeStruct((8, 128), jnp.float32),
            in_specs=[
                pl.BlockSpec(memory_space=pltpu.MemorySpace.SMEM),   # rho
                pl.BlockSpec(memory_space=pltpu.MemorySpace.VMEM),   # X (bf16)
                pl.BlockSpec(memory_space=pltpu.MemorySpace.VMEM),   # y row
                pl.BlockSpec(memory_space=pltpu.MemorySpace.VMEM),   # A (f32)
                pl.BlockSpec(memory_space=pltpu.MemorySpace.VMEM),   # c row
                pl.BlockSpec(memory_space=pltpu.MemorySpace.VMEM),   # dual row
                pl.BlockSpec(memory_space=pltpu.MemorySpace.VMEM),   # w bf16
                pl.BlockSpec(memory_space=pltpu.MemorySpace.VMEM),   # w f32
            ],
            out_specs=pl.BlockSpec(memory_space=pltpu.MemorySpace.VMEM),
        )(rho_arr, x_bf, y_row, a_f32, c_row, dual_row, w_bf, w_f32)
        return out[0, 0]

    # ---------------- tiled streaming path -----------------
    chunk = num_splits * tile_n
    inner = (N + chunk - 1) // chunk           # reduction steps per split
    n_pad = inner * chunk
    if n_pad != N:
        # zero rows contribute r = 0*w - 0 = 0, i.e. exactly nothing
        x_bf = jnp.pad(x_bf, ((0, n_pad - N), (0, 0)))
        y_row = jnp.pad(y_row, ((0, 0), (0, n_pad - N)))

    grid = (num_splits, inner)
    out = pl.pallas_call(
        _aug_lag_tiled_kernel,
        out_shape=jax.ShapeDtypeStruct((num_splits, 8, 128), jnp.float32),
        grid=grid,
        in_specs=[
            # rho scalar in SMEM
            pl.BlockSpec((1, 1), lambda j, i: (0, 0),
                         memory_space=pltpu.MemorySpace.SMEM),
            # streamed, double-buffered X row tiles
            pl.BlockSpec((tile_n, D), lambda j, i, inner=inner: (j * inner + i, 0)),
            # matching lane-dense y row tile
            pl.BlockSpec((1, tile_n), lambda j, i, inner=inner: (0, j * inner + i)),
            # resident constraint data (DMA'd once, reused every step)
            pl.BlockSpec((M, D), lambda j, i: (0, 0)),
            pl.BlockSpec((1, M), lambda j, i: (0, 0)),
            pl.BlockSpec((1, M), lambda j, i: (0, 0)),
            pl.BlockSpec((1, D), lambda j, i: (0, 0)),   # w bf16
            pl.BlockSpec((1, D), lambda j, i: (0, 0)),   # w f32
        ],
        # one (8,128) native tile per split: resident across the inner
        # (reduction) axis, written once under is_last, unmasked lane-dense.
        out_specs=pl.BlockSpec((1, 8, 128), lambda j, i: (j, 0, 0)),
        scratch_shapes=[pltpu.VMEM((1, tile_n), jnp.float32)],
        compiler_params=pltpu.CompilerParams(
            dimension_semantics=("parallel", "arbitrary"),
        ),
    )(rho_arr, x_bf, y_row, a_f32, c_row, dual_row, w_bf, w_f32)

    # each (8,128) block holds its split's partial sum broadcast across the tile
    return out[:, 0, 0].sum()


if __name__ == "__main__":
    # N data points, D model parameters, M scalar constraints.
    N, D, M = 1024, 128, 16
    key = jax.random.PRNGKey(0)
    ks = jax.random.split(key, 6)
    x32 = jax.random.normal(ks[0], (N, D), jnp.float32)   # data matrix X
    y = jax.random.normal(ks[1], (N,), jnp.float32)        # targets
    a = jax.random.normal(ks[2], (M, D), jnp.float32)      # constraint matrix A
    c = jax.random.normal(ks[3], (M,), jnp.float32)        # constraint rhs
    dual = jax.random.normal(ks[4], (M,), jnp.float32)     # dual_var
    w = jax.random.normal(ks[5], (D,), jnp.float32)        # model weights
    rho = 0.5

    # HBM-bound on X: cast once, outside the hot path.
    x = x32.astype(jnp.bfloat16)

    # Plain-JAX reference (objective with the same bf16-quantized X/w,
    # constraint in full f32 — matching the kernel).
    hp = jax.lax.Precision.HIGHEST

    def reference(xm32, ym):
        xq = xm32.astype(jnp.bfloat16).astype(jnp.float32)
        wq = w.astype(jnp.bfloat16).astype(jnp.float32)
        r_ref = jnp.dot(xq, wq, precision=hp) - ym
        g_ref = jnp.dot(a, w, precision=hp) - c
        return (0.5 * jnp.sum(r_ref * r_ref)
                + jnp.dot(dual, g_ref, precision=hp)
                + 0.5 * rho * jnp.sum(g_ref * g_ref))

    # 1) small-N fast path (single VMEM block, no grid) — default for this size
    res_fast = jax.block_until_ready(augmented_lagrangian(x, y, a, c, dual, w, rho))
    ref_full = reference(x32, y)
    assert jnp.allclose(res_fast, ref_full, rtol=5e-4, atol=1e-2), (res_fast, ref_full)

    # 2) tiled streaming path (forced), divisible N, two parallel splits
    res_tiled = jax.block_until_ready(
        augmented_lagrangian(x, y, a, c, dual, w, rho,
                             tile_n=256, num_splits=2, fast_path_bytes=0))
    assert jnp.allclose(res_tiled, ref_full, rtol=5e-4, atol=1e-2), (res_tiled, ref_full)

    # 3) tiled streaming path with ragged N (zero-padded tail tile)
    N2 = 1000
    res_ragged = jax.block_until_ready(
        augmented_lagrangian(x[:N2], y[:N2], a, c, dual, w, rho,
                             tile_n=256, num_splits=2, fast_path_bytes=0))
    ref_ragged = reference(x32[:N2], y[:N2])
    assert jnp.allclose(res_ragged, ref_ragged, rtol=5e-4, atol=1e-2), (res_ragged, ref_ragged)

    print("KERNEL_OK")
</pallas_src>

<mosaic_0001>
module attributes {stable_mosaic.version = 11 : i64} {
  func.func @_aug_lag_fast_kernel(%arg0: memref<1x1xf32, #tpu.memory_space<smem>>, %arg1: memref<1024x128xbf16, #tpu.memory_space<vmem>>, %arg2: memref<1x1024xf32, #tpu.memory_space<vmem>>, %arg3: memref<16x128xf32, #tpu.memory_space<vmem>>, %arg4: memref<1x16xf32, #tpu.memory_space<vmem>>, %arg5: memref<1x16xf32, #tpu.memory_space<vmem>>, %arg6: memref<1x128xbf16, #tpu.memory_space<vmem>>, %arg7: memref<1x128xf32, #tpu.memory_space<vmem>>, %arg8: memref<8x128xf32, #tpu.memory_space<vmem>>) attributes {dimension_semantics = [], scalar_prefetch = 0 : i64, scratch_operands = 0 : i64, tpu.core_type = #tpu.core_type<tc>} {
    %c0 = arith.constant 0 : index
    %c0_0 = arith.constant 0 : index
    %0 = vector.load %arg6[%c0, %c0_0] : memref<1x128xbf16, #tpu.memory_space<vmem>>, vector<1x128xbf16>
    %c0_1 = arith.constant 0 : index
    %c0_2 = arith.constant 0 : index
    %1 = vector.load %arg1[%c0_1, %c0_2] : memref<1024x128xbf16, #tpu.memory_space<vmem>>, vector<1024x128xbf16>
    %cst = arith.constant dense<0.000000e+00> : vector<1x1024xf32>
    %2 = tpu.matmul %0, %1, %cst {dimension_numbers = #tpu.dot_dimension_numbers<[1], [1], [0], [0], [0, 0, 1, 0], [], []>} : vector<1x128xbf16>, vector<1024x128xbf16>, vector<1x1024xf32> -> vector<1x1024xf32>
    %c0_3 = arith.constant 0 : index
    %c0_4 = arith.constant 0 : index
    %3 = vector.load %arg2[%c0_3, %c0_4] : memref<1x1024xf32, #tpu.memory_space<vmem>>, vector<1x1024xf32>
    %4 = arith.subf %2, %3 : vector<1x1024xf32>
    %c0_5 = arith.constant 0 : index
    %c0_6 = arith.constant 0 : index
    %5 = vector.load %arg7[%c0_5, %c0_6] : memref<1x128xf32, #tpu.memory_space<vmem>>, vector<1x128xf32>
    %c0_7 = arith.constant 0 : index
    %c0_8 = arith.constant 0 : index
    %6 = vector.load %arg3[%c0_7, %c0_8] : memref<16x128xf32, #tpu.memory_space<vmem>>, vector<16x128xf32>
    %cst_9 = arith.constant dense<0.000000e+00> : vector<1x16xf32>
    %7 = tpu.matmul %5, %6, %cst_9 {dimension_numbers = #tpu.dot_dimension_numbers<[1], [1], [0], [0], [0, 0, 1, 0], [], []>} : vector<1x128xf32>, vector<16x128xf32>, vector<1x16xf32> -> vector<1x16xf32>
    %c0_10 = arith.constant 0 : index
    %c0_11 = arith.constant 0 : index
    %8 = vector.load %arg4[%c0_10, %c0_11] : memref<1x16xf32, #tpu.memory_space<vmem>>, vector<1x16xf32>
    %9 = arith.subf %7, %8 : vector<1x16xf32>
    %10 = arith.mulf %4, %4 : vector<1x1024xf32>
    %11 = vector.shape_cast %10 : vector<1x1024xf32> to vector<1x1x1024xf32>
    %cst_12 = arith.constant dense<0.000000e+00> : vector<1xf32>
    %12 = vector.multi_reduction <add>, %11, %cst_12 [1, 2] : vector<1x1x1024xf32> to vector<1xf32>
    %13 = vector.shape_cast %12 : vector<1xf32> to vector<1x1x1xf32>
    %14 = vector.extract %13[0, 0, 0] : f32 from vector<1x1x1xf32>
    %cst_13 = arith.constant 5.000000e-01 : f32
    %15 = arith.mulf %cst_13, %14 : f32
    %c0_14 = arith.constant 0 : index
    %c0_15 = arith.constant 0 : index
    %16 = vector.load %arg5[%c0_14, %c0_15] : memref<1x16xf32, #tpu.memory_space<vmem>>, vector<1x16xf32>
    %17 = arith.mulf %16, %9 : vector<1x16xf32>
    %18 = vector.shape_cast %17 : vector<1x16xf32> to vector<1x1x16xf32>
    %cst_16 = arith.constant dense<0.000000e+00> : vector<1xf32>
    %19 = vector.multi_reduction <add>, %18, %cst_16 [1, 2] : vector<1x1x16xf32> to vector<1xf32>
    %20 = vector.shape_cast %19 : vector<1xf32> to vector<1x1x1xf32>
    %21 = vector.extract %20[0, 0, 0] : f32 from vector<1x1x1xf32>
    %22 = arith.addf %15, %21 : f32
    %c0_17 = arith.constant 0 : index
    %c0_18 = arith.constant 0 : index
    %23 = memref.load %arg0[%c0_17, %c0_18] : memref<1x1xf32, #tpu.memory_space<smem>>
    %cst_19 = arith.constant 5.000000e-01 : f32
    %24 = arith.mulf %cst_19, %23 : f32
    %25 = arith.mulf %9, %9 : vector<1x16xf32>
    %26 = vector.shape_cast %25 : vector<1x16xf32> to vector<1x1x16xf32>
    %cst_20 = arith.constant dense<0.000000e+00> : vector<1xf32>
    %27 = vector.multi_reduction <add>, %26, %cst_20 [1, 2] : vector<1x1x16xf32> to vector<1xf32>
    %28 = vector.shape_cast %27 : vector<1xf32> to vector<1x1x1xf32>
    %29 = vector.extract %28[0, 0, 0] : f32 from vector<1x1x1xf32>
    %30 = arith.mulf %24, %29 : f32
    %31 = arith.addf %22, %30 : f32
    %cst_21 = arith.constant 0.000000e+00 : f32
    %32 = vector.broadcast %cst_21 : f32 to vector<8x128xf32>
    %33 = vector.broadcast %31 : f32 to vector<8x128xf32>
    %34 = arith.addf %32, %33 : vector<8x128xf32>
    %c0_22 = arith.constant 0 : index
    %c0_23 = arith.constant 0 : index
    %35 = vector.load %arg8[%c0_22, %c0_23] : memref<8x128xf32, #tpu.memory_space<vmem>>, vector<8x128xf32>
    tpu.vector_store %arg8[%c0_22, %c0_23], %34 {strides = array<i32>} : memref<8x128xf32, #tpu.memory_space<vmem>>, vector<8x128xf32>,
    return
  }
}

</mosaic_0001>

<bundles_post_ra>
// kernel: tpu_custom_call.1
= control target key start
LH: loop header
LB: loop body
LE: loop exit
PB: predicated region body
PF: predicated region fallthrough
CT: control target
= control target key end

     0   :  { %14 = vsyncpa [#allocation4], 0  ;;  %s1367_s0 = inlined_call_operand.<no memory space> [shape: f32[1,1], index: 0, kind: input, shape index: {}]   ;;  %s1368_s1 = inlined_call_operand.hbm [shape: bf16[1024,128], index: 1, kind: input, shape index: {}]   ;;  %s1369_s2 = inlined_call_operand.hbm [shape: f32[1,1024], index: 2, kind: input, shape index: {}]   ;;  %s1370_s3 = inlined_call_operand.hbm [shape: f32[16,128], index: 3, kind: input, shape index: {}]   ;;  %s1371_s4 = inlined_call_operand.vmem [shape: f32[1,16], index: 4, kind: input, shape index: {}]   ;;  %s1372_s5 = inlined_call_operand.vmem [shape: f32[1,16], index: 5, kind: input, shape index: {}]   ;;  %s1373_s6 = inlined_call_operand.vmem [shape: bf16[1,128], index: 6, kind: input, shape index: {}]   ;;  %s1374_s7 = inlined_call_operand.vmem [shape: f32[1,128], index: 7, kind: input, shape index: {}]   ;;  %s1375_s8 = inlined_call_operand.hbm [shape: f32[8,128], index: 8, kind: output, shape index: {}]  }
   0x1   :  { %15 = vsyncpa [#allocation7], 0 }
   0x2   :  { %16 = vsyncpa [#allocation5], 0  ;;  %s1267_s27 = smov [#allocation6]   ;;  %s1268_s29 = smov [#allocation3]  }
   0x3   :  { %s37_s28 = sshll.u32 %s1267_s27, 4  ;;  %s24_s30 = sshll.u32 %s1268_s29, 4  ;;  %s38_s28 = int_to_ptr.vmem [resolvable:$true] %s37_s28  ;;  %s25_s30 = int_to_ptr.vmem [resolvable:$true] %s24_s30 }
   0x4   :  { %s1189_s9 = scalar_lea.vmem %s38_s28, 128  ;;  %p1194_p1 = scmp.lt.s32.totalorder %s38_s28, %s38_s28 }
   0x5   :  { %p1190_p0 = scmp.ne.s32.totalorder %s38_s28, %s1189_s9  ;;  %p1195_p2 = scmp.lt.s32.totalorder %s1189_s9, %s1189_s9 }
   0x7   :  { %p1196_p3 = por %p1195_p2, %p1194_p1 }
   0x9   :  { %p1197_p4 = pnand %p1196_p3, %p1190_p0 }
   0xb   :  { %1200 = shalt.err (!%p1197_p4)
}
   0xc   :  { %40 = dma.hbm_to_vmem [thread:$0]  %s1369_s2, 128, %s38_s28, [#allocation7]  }
   0xd   :  { %s1209_s12 = scalar_lea.vmem %s25_s30, 8192  ;;  %p1214_p6 = scmp.lt.s32.totalorder %s25_s30, %s25_s30 }
   0xe   :  { %p1210_p5 = scmp.ne.s32.totalorder %s25_s30, %s1209_s12  ;;  %p1215_p7 = scmp.lt.s32.totalorder %s1209_s12, %s1209_s12 }
  0x10   :  { %p1216_p8 = por %p1215_p7, %p1214_p6 }
  0x12   :  { %p1217_p9 = pnand %p1216_p8, %p1210_p5 }
  0x14   :  { %1220 = shalt.err (!%p1217_p9)
}
  0x15   :  { %s1269_s13 = smov 64   ;;  %s1270_s14 = smov 4  }
  0x16   :  { %30 = dma.hbm_to_vmem [thread:$0]  %s1368_s1, 8192, %s25_s30, [#allocation4], %s1269_s13, %s1269_s13, %s1270_s14  }
  0x17   :  { %s1271_s17 = smov [#allocation8]  }
  0x18   :  { %s46_s18 = sshll.u32 %s1271_s17, 4  ;;  %s47_s18 = int_to_ptr.vmem [resolvable:$true] %s46_s18 }
  0x19   :  { %s1229_s19 = scalar_lea.vmem %s47_s18, 256  ;;  %p1234_p11 = scmp.lt.s32.totalorder %s47_s18, %s47_s18 }
  0x1a   :  { %p1230_p10 = scmp.ne.s32.totalorder %s47_s18, %s1229_s19  ;;  %p1235_p12 = scmp.lt.s32.totalorder %s1229_s19, %s1229_s19 }
  0x1c   :  { %p1236_p13 = por %p1235_p12, %p1234_p11 }
  0x1e   :  { %p1237_p0 = pnand %p1236_p13, %p1230_p10 }
  0x20   :  { %1240 = shalt.err (!%p1237_p0)
}
  0x21   :  { %s1272_s2 = smov 128   ;;  %s1273_s20 = smov 8  }
  0x22   :  { %52 = dma.hbm_to_vmem [thread:$0]  %s1370_s3, 256, %s47_s18, [#allocation7], %s1272_s2, %s1272_s2, %s1273_s20  }
  0x23   :  { %1261 = dma.done.wait [#allocation4], 8192  }
  0x24   :  { %1262 = vsyncadd [#allocation4], 4294959104 }
  0x25   :  { %1263 = dma.done.wait [#allocation7], 384  }
  0x26   :  { %1264 = vsyncadd [#allocation7], 4294966912  ;;  %v1117_v0 = vld [vmem:[#allocation3 + $0x78] sm:$0xff]   ;;  %v1121_v4 = vld [vmem:[#allocation3 + $0x70] sm:$0xff]   ;;  %vm1275_vm0 = vmmov 0   ;;  %vm881_vm1 = vcmask 1040384  }
  0x27   :  { %v1118_v1 = vld [vmem:[#allocation3 + $0xf8] sm:$0xff]   ;;  %1019 = vmatprep.subr.bf16.mxu0 %v1117_v0  ;;  %v1122_v5 = vld [vmem:[#allocation3 + $0xf0] sm:$0xff]   ;;  %v1125_v8 = vld [vmem:[#allocation3 + $0x68] sm:$0xff]   ;;  %vm909_vm2 = vcmask 122880   ;;  %s922_s28 = smul.f32 0.5, %s1367_s0  ;;  %s1276_s12 = smov [#allocation9]  }
  0x28   :  { %v1119_v2 = vld [vmem:[#allocation3 + $0x38] sm:$0xff]   ;;  %1037 = vmatprep.subr.bf16.mxu1 %v1118_v1  ;;  %v1123_v6 = vld [vmem:[#allocation3 + $0x30] sm:$0xff]   ;;  %v1126_v9 = vld [vmem:[#allocation3 + $0xe8] sm:$0xff]   ;;  %v1274_v1 = vmov 0.0   ;;  %s945_s13 = sshll.u32 %s1276_s12, 4  ;;  %s946_s13 = int_to_ptr.vmem [resolvable:$true] %s945_s13 }
  0x29   :  { %v1120_v3 = vld [vmem:[#allocation3 + $0xb8] sm:$0xff]   ;;  %1020 = vmatpush3.bf16.xpose.msra.mxu0 %v1119_v2  ;;  %v1124_v7 = vld [vmem:[#allocation3 + $0xb0] sm:$0xff]   ;;  %v1127_v10 = vld [vmem:[#allocation3 + $0x28] sm:$0xff]   ;;  %s1241_s15 = scalar_lea.vmem %s946_s13, 128  ;;  %p1246_p2 = scmp.lt.s32.totalorder %s946_s13, %s946_s13 }
  0x2a   :  { %1038 = vmatpush3.bf16.xpose.msra.mxu1 %v1120_v3  ;;  %1021 = vmatprep.subr.bf16.mxu0 %v1121_v4  ;;  %v1128_v11 = vld [vmem:[#allocation3 + $0xa8] sm:$0xff]   ;;  %v1129_v12 = vld [vmem:[#allocation3 + $0x60] sm:$0xff]   ;;  %v1133_v16 = vld [vmem:[#allocation3 + $0x58] sm:$0xff]   ;;  %p1242_p1 = scmp.ne.s32.totalorder %s946_s13, %s1241_s15  ;;  %p1247_p3 = scmp.lt.s32.totalorder %s1241_s15, %s1241_s15 }
  0x2b   :  { %1039 = vmatprep.subr.bf16.mxu1 %v1122_v5  ;;  %v1130_v13 = vld [vmem:[#allocation3 + $0xe0] sm:$0xff]   ;;  %v1134_v17 = vld [vmem:[#allocation3 + $0xd8] sm:$0xff]   ;;  %v1137_v21 = vld [vmem:[#allocation3 + $0x50] sm:$0xff]  }
  0x2c   :  { %v1131_v14 = vld [vmem:[#allocation3 + $0x20] sm:$0xff]   ;;  %v1135_v18 = vld [vmem:[#allocation3 + $0x18] sm:$0xff]   ;;  %v1138_v22 = vld [vmem:[#allocation3 + $0xd0] sm:$0xff]   ;;  %p1248_p4 = por %p1247_p3, %p1246_p2 }
  0x2d   :  { %v1132_v15 = vld [vmem:[#allocation3 + $0xa0] sm:$0xff]   ;;  %v1136_v19 = vld [vmem:[#allocation3 + $0x98] sm:$0xff]   ;;  %v1139_v23 = vld [vmem:[#allocation3 + $0x10] sm:$0xff]  }
  0x2e   :  { %v1334_v20 = vld [vmem:[%s1373_s6] sm:$0x1]  ;;  %v1140_v24 = vld [vmem:[#allocation3 + $0x90] sm:$0xff]   ;;  %v1141_v25 = vld [vmem:[#allocation3 + $0x48] sm:$0xff]   ;;  %p1249_p5 = pnand %p1248_p4, %p1242_p1 }
  0x2f   :  { %1035 = vmatprep.mubr.bf16.mxu0 %v1334_v20  ;;  %1053 = vmatprep.mubr.bf16.mxu1 %v1334_v20  ;;  %v1142_v26 = vld [vmem:[#allocation3 + $0xc8] sm:$0xff]   ;;  %v1145_v29 = vld [vmem:[#allocation3 + $0x40] sm:$0xff]   ;;  %v1149_v33 = vld [vmem:[#allocation3 + $0x178] sm:$0xff]  }
  0x30   :  { %v1143_v27 = vld [vmem:[#allocation3 + $0x8] sm:$0xff]   ;;  %v1146_v30 = vld [vmem:[#allocation3 + $0xc0] sm:$0xff]   ;;  %v1150_v34 = vld [vmem:[#allocation3 + $0x1f8] sm:$0xff]  }
  0x31   :  { %1022 = vmatpush3.bf16.xpose.msra.mxu0 %v1123_v6  ;;  %v1144_v28 = vld [vmem:[#allocation3 + $0x88] sm:$0xff]   ;;  %v1147_v31 = vld [vmem:[#allocation3] sm:$0xff]   ;;  %v1151_v35 = vld [vmem:[#allocation3 + $0x138] sm:$0xff]  }
  0x32   :  { %1040 = vmatpush3.bf16.xpose.msra.mxu1 %v1124_v7  ;;  %1023 = vmatprep.subr.bf16.mxu0 %v1125_v8  ;;  %v1148_v32 = vld [vmem:[#allocation3 + $0x80] sm:$0xff]   ;;  %v1152_v36 = vld [vmem:[#allocation3 + $0x1b8] sm:$0xff]   ;;  %v1153_v37 = vld [vmem:[#allocation3 + $0x170] sm:$0xff]  }
  0x33   :  { %1041 = vmatprep.subr.bf16.mxu1 %v1126_v9  ;;  %v1154_v38 = vld [vmem:[#allocation3 + $0x1f0] sm:$0xff]   ;;  %v1157_v41 = vld [vmem:[#allocation3 + $0x168] sm:$0xff]   ;;  %v1161_v45 = vld [vmem:[#allocation3 + $0x160] sm:$0xff]  }
  0x34   :  { %v1155_v39 = vld [vmem:[#allocation3 + $0x130] sm:$0xff]   ;;  %v1158_v42 = vld [vmem:[#allocation3 + $0x1e8] sm:$0xff]   ;;  %v1162_v46 = vld [vmem:[#allocation3 + $0x1e0] sm:$0xff]  }
  0x35   :  { %v1156_v40 = vld [vmem:[#allocation3 + $0x1b0] sm:$0xff]   ;;  %v1159_v43 = vld [vmem:[#allocation3 + $0x128] sm:$0xff]   ;;  %v1163_v47 = vld [vmem:[#allocation3 + $0x120] sm:$0xff]  }
  0x36   :  { %v1160_v44 = vld [vmem:[#allocation3 + $0x1a8] sm:$0xff]   ;;  %v1164_v48 = vld [vmem:[#allocation3 + $0x1a0] sm:$0xff]   ;;  %v1165_v49 = vld [vmem:[#allocation3 + $0x158] sm:$0xff]  }
  0x37   :  { %v1166_v50 = vld [vmem:[#allocation3 + $0x1d8] sm:$0xff]   ;;  %v1169_v53 = vld [vmem:[#allocation3 + $0x150] sm:$0xff]   ;;  %v1173_v57 = vld [vmem:[#allocation3 + $0x148] sm:$0xff]  }
  0x38   :  { %v1167_v51 = vld [vmem:[#allocation3 + $0x118] sm:$0xff]   ;;  %v1170_v54 = vld [vmem:[#allocation3 + $0x1d0] sm:$0xff]   ;;  %v1174_v58 = vld [vmem:[#allocation3 + $0x1c8] sm:$0xff]  }
  0x39   :  { %1024 = vmatpush3.bf16.xpose.msra.mxu0 %v1127_v10  ;;  %v1168_v52 = vld [vmem:[#allocation3 + $0x198] sm:$0xff]   ;;  %v1171_v55 = vld [vmem:[#allocation3 + $0x110] sm:$0xff]   ;;  %v1175_v59 = vld [vmem:[#allocation3 + $0x108] sm:$0xff]  }
  0x3a   :  { %1042 = vmatpush3.bf16.xpose.msra.mxu1 %v1128_v11  ;;  %1025 = vmatprep.subr.bf16.mxu0 %v1129_v12  ;;  %v1172_v56 = vld [vmem:[#allocation3 + $0x190] sm:$0xff]   ;;  %v1176_v60 = vld [vmem:[#allocation3 + $0x188] sm:$0xff]   ;;  %v1177_v61 = vld [vmem:[#allocation3 + $0x140] sm:$0xff]  }
  0x3b   :  { %1043 = vmatprep.subr.bf16.mxu1 %v1130_v13  ;;  %v1178_v62 = vld [vmem:[#allocation3 + $0x1c0] sm:$0xff]   ;;  %v800_v2 = vld [vmem:[#allocation8 + $0x8] sm:$0xff]  ;;  %v799_v3 = vld [vmem:[#allocation8] sm:$0xff]  ;;  %v750_v13 = vlaneseq }
  0x3c   :  { %v1179_v63 = vld [vmem:[#allocation3 + $0x100] sm:$0xff]  }
  0x3d   :  { %v1180_v0 = vld [vmem:[#allocation3 + $0x180] sm:$0xff]  }
  0x3e   :  { %v798_v4 = vld [vmem:[%s1374_s7] sm:$0x1] }
  0x41   :  { %1026 = vmatpush3.bf16.xpose.msra.mxu0 %v1131_v14  ;;  %v751_v14 = vshrl.u32 %v750_v13, 7 }
  0x42   :  { %1044 = vmatpush3.bf16.xpose.msra.mxu1 %v1132_v15  ;;  %1027 = vmatprep.subr.bf16.mxu0 %v1133_v16 }
  0x43   :  { %1045 = vmatprep.subr.bf16.mxu1 %v1134_v17  ;;  %v752_v15 = vsub.s32 0, %v751_v14  ;;  %v756_v16 = vsub.s32 1, %v751_v14  ;;  %v748_v17 = vld [vmem:[#allocation6] sm:$0xff] }
  0x49   :  { %1028 = vmatpush3.bf16.xpose.msra.mxu0 %v1135_v18  ;;  %v753_v18 = vrot.slane %v748_v17, %v752_v15 }
  0x4a   :  { %1046 = vmatpush3.bf16.xpose.msra.mxu1 %v1136_v19  ;;  %1029 = vmatprep.subr.bf16.mxu0 %v1137_v21  ;;  %v760_v19 = vsub.s32 2, %v751_v14 }
  0x4b   :  { %1047 = vmatprep.subr.bf16.mxu1 %v1138_v22 }
  0x4c   :  { %v761_v22 = vrot.slane %v748_v17, %v760_v19 }
  0x51   :  { %1030 = vmatpush3.bf16.xpose.msra.mxu0 %v1139_v23 }
  0x52   :  { %1048 = vmatpush3.bf16.xpose.msra.mxu1 %v1140_v24  ;;  %1031 = vmatprep.subr.bf16.mxu0 %v1141_v25  ;;  %v764_v24 = vsub.s32 3, %v751_v14 }
  0x53   :  { %1049 = vmatprep.subr.bf16.mxu1 %v1142_v26 }
  0x59   :  { %1032 = vmatpush3.bf16.xpose.msra.mxu0 %v1143_v27 }
  0x5a   :  { %1050 = vmatpush3.bf16.xpose.msra.mxu1 %v1144_v28  ;;  %1033 = vmatprep.subr.bf16.mxu0 %v1145_v29  ;;  %v765_v28 = vrot.slane %v748_v17, %v764_v24  ;;  %v768_v29 = vsub.s32 4, %v751_v14 }
  0x5b   :  { %1051 = vmatprep.subr.bf16.mxu1 %v1146_v30 }
  0x61   :  { %1034 = vmatpush3.bf16.xpose.msra.mxu0 %v1147_v31 }
  0x62   :  { %1052 = vmatpush3.bf16.xpose.msra.mxu1 %v1148_v32  ;;  %1055 = vmatprep.subr.bf16.mxu0 %v1149_v33 }
  0x63   :  { %1073 = vmatprep.subr.bf16.mxu1 %v1150_v34  ;;  %v776_v34 = vsub.s32 6, %v751_v14 }
  0x68   :  { %1036 = vmatmul.mubr.bf16.vlgmr.msra.gmra.mxu0 %v1334_v20 }
  0x69   :  { %1054 = vmatmul.mubr.bf16.vlgmr.msra.gmra.mxu1 %v1334_v20  ;;  %1056 = vmatpush3.bf16.xpose.msra.mxu0 %v1151_v35  ;;  %v772_v35 = vsub.s32 5, %v751_v14 }
  0x6a   :  { %1074 = vmatpush3.bf16.xpose.msra.mxu1 %v1152_v36  ;;  %1057 = vmatprep.subr.bf16.mxu0 %v1153_v37  ;;  %v780_v37 = vsub.s32 7, %v751_v14 }
  0x6b   :  { %1075 = vmatprep.subr.bf16.mxu1 %v1154_v38  ;;  %1071 = vmatprep.mubr.bf16.mxu0 %v1334_v20 }
  0x6c   :  { %1089 = vmatprep.mubr.bf16.mxu1 %v1334_v20 }
  0x71   :  { %1058 = vmatpush3.bf16.xpose.msra.mxu0 %v1155_v39 }
  0x72   :  { %1076 = vmatpush3.bf16.xpose.msra.mxu1 %v1156_v40  ;;  %1059 = vmatprep.subr.bf16.mxu0 %v1157_v41  ;;  %v769_v40 = vrot.slane %v748_v17, %v768_v29  ;;  %v777_v41 = vrot.slane %v748_v17, %v776_v34 }
  0x73   :  { %1077 = vmatprep.subr.bf16.mxu1 %v1158_v42  ;;  %v773_v42 = vrot.slane %v748_v17, %v772_v35 }
  0x79   :  { %1060 = vmatpush3.bf16.xpose.msra.mxu0 %v1159_v43 }
  0x7a   :  { %1078 = vmatpush3.bf16.xpose.msra.mxu1 %v1160_v44  ;;  %1061 = vmatprep.subr.bf16.mxu0 %v1161_v45  ;;  %v781_v45 = vrot.slane %v748_v17, %v780_v37 }
  0x7b   :  { %1079 = vmatprep.subr.bf16.mxu1 %v1162_v46 }
  0x81   :  { %1062 = vmatpush3.bf16.xpose.msra.mxu0 %v1163_v47 }
  0x82   :  { %1080 = vmatpush3.bf16.xpose.msra.mxu1 %v1164_v48  ;;  %1063 = vmatprep.subr.bf16.mxu0 %v1165_v49 }
  0x83   :  { %1081 = vmatprep.subr.bf16.mxu1 %v1166_v50 }
  0x89   :  { %1064 = vmatpush3.bf16.xpose.msra.mxu0 %v1167_v51 }
  0x8a   :  { %1082 = vmatpush3.bf16.xpose.msra.mxu1 %v1168_v52  ;;  %1065 = vmatprep.subr.bf16.mxu0 %v1169_v53 }
  0x8b   :  { %1083 = vmatprep.subr.bf16.mxu1 %v1170_v54 }
  0x91   :  { %1066 = vmatpush3.bf16.xpose.msra.mxu0 %v1171_v55 }
  0x92   :  { %1084 = vmatpush3.bf16.xpose.msra.mxu1 %v1172_v56  ;;  %1067 = vmatprep.subr.bf16.mxu0 %v1173_v57 }
  0x93   :  { %1085 = vmatprep.subr.bf16.mxu1 %v1174_v58 }
  0x99   :  { %1068 = vmatpush3.bf16.xpose.msra.mxu0 %v1175_v59 }
  0x9a   :  { %1086 = vmatpush3.bf16.xpose.msra.mxu1 %v1176_v60  ;;  %1069 = vmatprep.subr.bf16.mxu0 %v1177_v61 }
  0x9b   :  { %1087 = vmatprep.subr.bf16.mxu1 %v1178_v62 }
  0xa1   :  { %1070 = vmatpush3.bf16.xpose.msra.mxu0 %v1179_v63  ;;  %v871_v63 = vld [vmem:[%s1371_s4] sm:$0x1] }
  0xa2   :  { %1088 = vmatpush3.bf16.xpose.msra.mxu1 %v1180_v0  ;;  %1094 = vmatprep.subr.mxu0 %v1274_v1 }
  0xa8   :  { %1072 = vmatmul.mubr.bf16.vlgmr.msra.gmra.mxu0 %v1334_v20 }
  0xa9   :  { %1090 = vmatmul.mubr.bf16.vlgmr.msra.gmra.mxu1 %v1334_v20  ;;  %1095 = vmatpush3.xpose.msra.mxu0 %v800_v2  ;;  %v757_v20 = vrot.slane %v748_v17, %v756_v16 }
  0xaa   :  { %1096 = vmatprep.subr.mxu0 %v1274_v1  ;;  %1098 = vmatprep.mubr.msk.f32.mxu0 %vm1275_vm0, %v1274_v1 }
  0xad   :  { %1097 = vmatpush3.xpose.msra.mxu0 %v799_v3 }
  0xb0   :  { %1099 = vmatmul.mubr.f32.vlgmr.msra.gmra.mxu0 %v798_v4 }
 0x128   :  { %v618_v5 = vpop.f32.mrf.mxu0 }
 0x129   :  { %v659_v6 = vpop.f32.mrf.mxu1  ;;  %v790_v21 = vsub.f32 %v618_v5, %v753_v18 }
 0x12a   :  { %v620_v7 = vpop.f32.mrf.mxu0  ;;  %v792_v26 = vsub.f32 %v659_v6, %v761_v22  ;;  %v907_v6 = vld [vmem:[%s1372_s5] sm:$0x1] }
 0x12b   :  { %v661_v8 = vpop.f32.mrf.mxu1  ;;  %v791_v23 = vsub.f32 %v620_v7, %v757_v20  ;;  %v873_v25 = vmul.f32 %v790_v21, %v790_v21 }
 0x12c   :  { %v622_v9 = vpop.f32.mrf.mxu0  ;;  %v875_v31 = vmul.f32 %v792_v26, %v792_v26  ;;  %v793_v33 = vsub.f32 %v661_v8, %v765_v28 }
 0x12d   :  { %v663_v10 = vpop.f32.mrf.mxu1  ;;  %v874_v27 = vmul.f32 %v791_v23, %v791_v23  ;;  %v882_v30 = vsel %vm881_vm1, %v873_v25, 0.0 }
 0x12e   :  { %v623_v11 = vpop.f32.mrf.mxu0  ;;  %v885_v38 = vsel %vm881_vm1, %v875_v31, 0.0  ;;  %v876_v39 = vmul.f32 %v793_v33, %v793_v33 }
 0x12f   :  { %v664_v12 = vpop.f32.mrf.mxu1  ;;  %v883_v32 = vsel %vm881_vm1, %v874_v27, 0.0 }
 0x130   :  { %v884_v36 = vadd.f32 %v883_v32, %v882_v30  ;;  %v887_v46 = vsel %vm881_vm1, %v876_v39, 0.0 }
 0x132   :  { %v886_v43 = vadd.f32 %v885_v38, %v884_v36 }
 0x134   :  { %v888_v54 = vadd.f32 %v887_v46, %v886_v43 }
 0x168   :  { %v700_v44 = vpop.f32.mrf.mxu0 }
 0x169   :  { %v794_v47 = vsub.f32 %v700_v44, %v769_v40  ;;  %v741_v48 = vpop.f32.mrf.mxu1 }
 0x16a   :  { %v796_v49 = vsub.f32 %v741_v48, %v777_v41  ;;  %v702_v50 = vpop.f32.mrf.mxu0 }
 0x16b   :  { %v877_v51 = vmul.f32 %v794_v47, %v794_v47  ;;  %v795_v52 = vsub.f32 %v702_v50, %v773_v42  ;;  %v743_v53 = vpop.f32.mrf.mxu1 }
 0x16c   :  { %v879_v55 = vmul.f32 %v796_v49, %v796_v49  ;;  %v797_v56 = vsub.f32 %v743_v53, %v781_v45  ;;  %v704_v57 = vpop.f32.mrf.mxu0 }
 0x16d   :  { %v889_v58 = vsel %vm881_vm1, %v877_v51, 0.0  ;;  %v878_v59 = vmul.f32 %v795_v52, %v795_v52  ;;  %v745_v60 = vpop.f32.mrf.mxu1 }
 0x16e   :  { %v890_v61 = vadd.f32 %v889_v58, %v888_v54  ;;  %v705_v62 = vpop.f32.mrf.mxu0  ;;  %v880_v1 = vmul.f32 %v797_v56, %v797_v56  ;;  %v893_v3 = vsel %vm881_vm1, %v879_v55, 0.0 }
 0x16f   :  { %v891_v0 = vsel %vm881_vm1, %v878_v59, 0.0  ;;  %v746_v2 = vpop.f32.mrf.mxu1 }
 0x170   :  { %v867_v4 = vpop.f32.mrf.mxu0  ;;  %v892_v5 = vadd.f32 %v891_v0, %v890_v61  ;;  %v895_v10 = vsel %vm881_vm1, %v880_v1, 0.0 }
 0x171   :  { %v872_v7 = vsub.f32 %v867_v4, %v871_v63 }
 0x172   :  { %v1100_v8 = vpop.f32.mrf.mxu0  ;;  %v894_v9 = vadd.f32 %v893_v3, %v892_v5 }
 0x173   :  { %v923_v11 = vmul.f32 %v872_v7, %v872_v7  ;;  %v908_v12 = vmul.f32 %v907_v6, %v872_v7 }
 0x174   :  { %v896_v13 = vadd.f32 %v895_v10, %v894_v9 }
 0x175   :  { %v924_v14 = vsel %vm909_vm2, %v923_v11, 0.0  ;;  %v910_v15 = vsel %vm909_vm2, %v908_v12, 0.0 }
 0x176   :  { %897 = vadd.xlane.f32.xlu0 %v896_v13  ;;  %925 = vadd.xlane.f32.xlu1 %v924_v14 }
 0x17a   :  { %911 = vadd.xlane.f32.xlu0 %v910_v15 }
 0x1ff   :  { %v898_v16 = vpop.xlane.xlu0 %897  ;;  %v926_v17 = vpop.xlane.xlu1 %925 }
 0x200   :  { %v899_v18 = vrot.slane %v898_v16, 4  ;;  %v927_v19 = vrot.slane %v926_v17, 4 }
 0x202   :  { %v900_v20 = vadd.f32 %v899_v18, %v898_v16  ;;  %v928_v21 = vadd.f32 %v927_v19, %v926_v17 }
 0x203   :  { %v912_v22 = vpop.xlane.xlu0 %911 }
 0x204   :  { %v901_v23 = vrot.slane %v900_v20, 2  ;;  %v929_v24 = vrot.slane %v928_v21, 2  ;;  %v913_v25 = vrot.slane %v912_v22, 4 }
 0x206   :  { %v914_v26 = vadd.f32 %v913_v25, %v912_v22  ;;  %v902_v27 = vadd.f32 %v901_v23, %v900_v20  ;;  %v930_v28 = vadd.f32 %v929_v24, %v928_v21 }
 0x208   :  { %v915_v29 = vrot.slane %v914_v26, 2  ;;  %v903_v30 = vrot.slane %v902_v27, 1  ;;  %v931_v33 = vrot.slane %v930_v28, 1 }
 0x20a   :  { %v916_v31 = vadd.f32 %v915_v29, %v914_v26  ;;  %v904_v32 = vadd.f32 %v903_v30, %v902_v27  ;;  %v932_v36 = vadd.f32 %v931_v33, %v930_v28 }
 0x20c   :  { %1101 = vpush %v904_v32  ;;  %v917_v34 = vrot.slane %v916_v31, 1 }
 0x20e   :  { %v918_v35 = vadd.f32 %v917_v34, %v916_v31 }
 0x210   :  { %1103 = vpush %v918_v35 }
 0x211   :  { %1105 = vpush %v932_v36 }
 0x23d   :  { %s1102_s4 = spop %1101 }
 0x23e   :  { %s906_s29 = smul.f32 0.5, %s1102_s4 }
 0x241   :  { %s1104_s30 = spop %1103 }
 0x242   :  { %s920_s9 = sadd.f32 %s1104_s30, %s906_s29  ;;  %s1106_s10 = spop %1105 }
 0x243   :  { %s934_s11 = smul.f32 %s1106_s10, %s922_s28 }
 0x245   :  { %s935_s14 = sadd.f32 %s934_s11, %s920_s9 }
 0x247   :  { %v936_v37 = vstv %s935_s14 }
 0x248   :  { %938 = vst [vmem:[#allocation9] sm:$0xff] %v936_v37 }
 0x249   :  { %1252 = shalt.err (!%p1249_p5)
}
 0x24a   :  { %948 = dma.vmem_to_hbm [thread:$0]  %s946_s13, 128, %s1375_s8, [#allocation5]  }
 0x24b   :  { %1265 = dma.done.wait [#allocation5], 128  }
 0x24c   :  { %1266 = vsyncadd [#allocation5], 4294967168 }
 0x24d   :  { %952 = vsyncpa [#allocation4], 1 }
 0x24e   :  { %953 = vsyncpa [#allocation7], 1 }
 0x24f   :  { %954 = vsyncpa [#allocation5], 1 }

</bundles_post_ra>
